<compile_context>
chip_gen: v7x
topology: tpu7x:2x2x1
jax: 0.10.0
libtpu: 0.0.40
codegen_flags: <defaults>
</compile_context>

<pallas_src>
import math

import jax
import jax.numpy as jnp
from jax.experimental import pallas as pl
from jax.experimental.pallas import tpu as pltpu

_LANE = 128

# Generation-aware VMEM budget (v7x: 64 MiB/TC, v5e/v6e: 128 MiB).
try:
    _VMEM_BUDGET = int(pltpu.get_tpu_info().vmem_capacity_bytes)
except Exception:  # pragma: no cover - conservative fallback
    _VMEM_BUDGET = 64 * 1024 * 1024

# One block ~ 1/16 of VMEM, capped at 8 MiB:
#   v7x  -> 4 MiB blocks, 16 MiB of double-buffered in+out
#   v5e/v6e -> 8 MiB blocks, 32 MiB of double-buffered in+out
_BLOCK_BYTES = max(512 * 1024, min(8 * 1024 * 1024, _VMEM_BUDGET // 16))
_VMEM_LIMIT_BYTES = min(_VMEM_BUDGET, max(32 * 1024 * 1024, 6 * _BLOCK_BYTES))


def _round_up(n, m):
    return ((n + m - 1) // m) * m


def scaled_softplus_kernel(inv_scale_ref, x_ref, o_ref):
    x = x_ref[...].astype(jnp.float32)                        # (block_rows, 128)
    # Numerically-stable log(1 + exp(x)):  EUP exp + log1p, VPU max/abs/add.
    sp = jnp.maximum(x, 0.0) + jnp.log1p(jnp.exp(-jnp.abs(x)))
    o_ref[...] = (inv_scale_ref[0] * sp).astype(o_ref.dtype)  # scalar from SMEM


@jax.jit
def scaled_softplus(x, scal):
    # ---- hoisted grid-invariant parameter math ----
    inv_scale = (1.0 / jax.nn.softplus(scal.astype(jnp.float32))).reshape(1)

    orig_shape = x.shape
    n = math.prod(orig_shape) if orig_shape else 1

    itemsize = jnp.dtype(x.dtype).itemsize
    # Native packed sublane count: 8 rows (f32), 16 (bf16), 32 (int8/fp8).
    sublane = 8 * max(1, 4 // itemsize)

    # ---- lane-dense 2D layout: (rows, 128) ----
    rows = -(-n // _LANE)            # ceil(n / 128)
    padded_n = rows * _LANE

    flat = x.reshape(-1)
    if padded_n != n:
        # Tail-only pad: strictly less than one 128-lane row.
        flat = jnp.pad(flat, (0, padded_n - n))
    x2d = flat.reshape(rows, _LANE)

    # ---- block sizing: biggest dtype-aligned block within the byte budget ----
    row_bytes = _LANE * itemsize
    max_block_rows = max((_BLOCK_BYTES // row_bytes) // sublane * sublane, sublane)

    if rows <= max_block_rows:
        block_rows = rows            # single full-extent block (no divisibility constraint)
        num_blocks = 1
    else:
        block_rows = max_block_rows
        num_blocks = pl.cdiv(rows, block_rows)
        # v7x megacore: prefer an even number of grid steps so the "parallel"
        # axis splits evenly across the two TensorCores.
        if num_blocks % 2 == 1:
            cand = _round_up(-(-rows // (num_blocks + 1)), sublane)
            if cand >= sublane and pl.cdiv(rows, cand) % 2 == 0:
                block_rows = cand
                num_blocks = pl.cdiv(rows, cand)

    out2d = pl.pallas_call(
        scaled_softplus_kernel,
        out_shape=jax.ShapeDtypeStruct((rows, _LANE), x.dtype),
        grid_spec=pltpu.PrefetchScalarGridSpec(
            num_scalar_prefetch=0,
            grid=(num_blocks,),
            in_specs=[
                # inverse scale: tiny scalar, lives in SMEM for the whole call
                pl.BlockSpec(memory_space=pltpu.MemorySpace.SMEM),
                # x: streamed lane-dense tiles, auto double-buffered;
                # ragged last block handled by Pallas (OOB writes dropped)
                pl.BlockSpec((block_rows, _LANE), lambda i: (i, 0)),
            ],
            out_specs=pl.BlockSpec((block_rows, _LANE), lambda i: (i, 0)),
        ),
        compiler_params=pltpu.CompilerParams(
            dimension_semantics=("parallel",),
            vmem_limit_bytes=_VMEM_LIMIT_BYTES,
        ),
    )(inv_scale, x2d)

    if padded_n != n:
        return out2d.reshape(-1)[:n].reshape(orig_shape)
    return out2d.reshape(orig_shape)     # free reshape (same element count)


def scaled_softplus_ref(x, scal):
    """Pure-JAX reference mirroring the PyTorch forward exactly."""
    scalar = jax.nn.softplus(scal)
    return (1.0 / scalar) * jnp.log1p(jnp.exp(x))


if __name__ == "__main__":
    key = jax.random.PRNGKey(0)
    k_x, k_s = jax.random.split(key, 2)

    # Small shapes consistent with an elementwise activation module.
    x = jax.random.normal(k_x, (2, 4, 16, 16), dtype=jnp.float32)
    # Learnable scalar parameter (init_scal perturbed a bit).
    scal = jnp.array(1.0, dtype=jnp.float32) + 0.5 * jax.random.normal(
        k_s, (), dtype=jnp.float32)

    out = scaled_softplus(x, scal)
    out = jax.block_until_ready(out)

    ref = scaled_softplus_ref(x, scal)
    assert out.shape == x.shape
    assert jnp.allclose(out, ref, atol=1e-5, rtol=1e-5), "mismatch vs reference"

    # Also exercise a non-128-multiple (tail-padded) size to cover the ragged path.
    x_odd = jax.random.normal(k_x, (3, 5, 7), dtype=jnp.float32)
    out_odd = jax.block_until_ready(scaled_softplus(x_odd, scal))
    assert out_odd.shape == x_odd.shape
    assert jnp.allclose(out_odd, scaled_softplus_ref(x_odd, scal),
                        atol=1e-5, rtol=1e-5), "mismatch vs reference (ragged)"

    print("KERNEL_OK")
</pallas_src>

<mosaic_0001>
module attributes {stable_mosaic.version = 11 : i64} {
  func.func @scaled_softplus_kernel(%arg0: i32, %arg1: memref<1xf32, #tpu.memory_space<smem>>, %arg2: memref<16x128xf32, #tpu.memory_space<vmem>>, %arg3: memref<16x128xf32, #tpu.memory_space<vmem>>) attributes {dimension_semantics = [#tpu.dimension_semantics<parallel>], iteration_bounds = array<i64: 1>, scalar_prefetch = 0 : i64, scratch_operands = 0 : i64, tpu.core_type = #tpu.core_type<tc>, window_params = [{transform_indices = @transform_0, window_bounds = array<i64: 1>}, {transform_indices = @transform_1, window_bounds = array<i64: 16, 128>}, {transform_indices = @transform_2, window_bounds = array<i64: 16, 128>}]} {
    %c0 = arith.constant 0 : index
    %c0_0 = arith.constant 0 : index
    %0 = vector.load %arg2[%c0, %c0_0] : memref<16x128xf32, #tpu.memory_space<vmem>>, vector<16x128xf32>
    %cst = arith.constant 0.000000e+00 : f32
    %1 = vector.broadcast %cst : f32 to vector<16x128xf32>
    %2 = arith.maximumf %0, %1 : vector<16x128xf32>
    %3 = math.absf %0 : vector<16x128xf32>
    %cst_1 = arith.constant 0.000000e+00 : f32
    %4 = vector.broadcast %cst_1 : f32 to vector<16x128xf32>
    %5 = arith.subf %4, %3 : vector<16x128xf32>
    %6 = math.exp %5 : vector<16x128xf32>
    %7 = math.log1p %6 : vector<16x128xf32>
    %8 = arith.addf %2, %7 : vector<16x128xf32>
    %c0_2 = arith.constant 0 : index
    %9 = memref.load %arg1[%c0_2] : memref<1xf32, #tpu.memory_space<smem>>
    %10 = vector.broadcast %9 : f32 to vector<16x128xf32>
    %11 = arith.mulf %10, %8 : vector<16x128xf32>
    %c0_3 = arith.constant 0 : index
    %c0_4 = arith.constant 0 : index
    %12 = vector.load %arg3[%c0_3, %c0_4] : memref<16x128xf32, #tpu.memory_space<vmem>>, vector<16x128xf32>
    tpu.vector_store %arg3[%c0_3, %c0_4], %11 {strides = array<i32>} : memref<16x128xf32, #tpu.memory_space<vmem>>, vector<16x128xf32>,
    return
  }
  func.func @transform_0(%arg0: i32) -> i32 {
    %c0_i32 = arith.constant 0 : i32
    %c0_i32_0 = arith.constant 0 : i32
    return %c0_i32 : i32
  }
  func.func @transform_1(%arg0: i32) -> (i32, i32) {
    %c0_i32 = arith.constant 0 : i32
    %c0_i32_0 = arith.constant 0 : i32
    return %arg0, %c0_i32 : i32, i32
  }
  func.func @transform_2(%arg0: i32) -> (i32, i32) {
    %c0_i32 = arith.constant 0 : i32
    %c0_i32_0 = arith.constant 0 : i32
    return %arg0, %c0_i32 : i32, i32
  }
}

</mosaic_0001>

<bundles_post_ra>
// kernel: scaled_softplus.1
= control target key start
LH: loop header
LB: loop body
LE: loop exit
PB: predicated region body
PF: predicated region fallthrough
CT: control target
= control target key end

     0   :  { %s92_s1 = inlined_call_operand.vmem [shape: f32[16,128], index: 1, kind: input, shape index: {}]   ;;  %s93_s0 = inlined_call_operand.<no memory space> [shape: f32[1], index: 0, kind: input, shape index: {}]   ;;  %s94_s2 = inlined_call_operand.vmem [shape: f32[16,128], index: 2, kind: output, shape index: {}]  }
   0x1   :  { %v12_v0 = vld [vmem:[%s92_s1] sm:$0xff]  ;;  %v13_v1 = vld [vmem:[%s92_s1 + $0x8] sm:$0xff]  ;;  %v45_v27 = vstv %s93_s0 }
   0x2   :  { %v16_v2 = vand.u32 2147483647, %v12_v0  ;;  %v17_v3 = vand.u32 2147483647, %v13_v1  ;;  %v14_v20 = vmax.f32 %v12_v0, 0.0  ;;  %v15_v24 = vmax.f32 %v13_v1, 0.0 }
   0x4   :  { %v18_v4 = vsub.f32 0.0, %v16_v2  ;;  %v19_v5 = vsub.f32 0.0, %v17_v3 }
   0x6   :  { %v20_v6 = vmul.f32 1.442695, %v18_v4  ;;  %v22_v7 = vmul.f32 1.442695, %v19_v5 }
   0x8   :  { %54 = vpow2.f32 %v20_v6 }
   0x9   :  { %56 = vpow2.f32 %v22_v7 }
  0x12   :  { %v55_v8 = vpop.eup %54 }
  0x13   :  { %v57_v9 = vpop.eup %56  ;;  %v24_v10 = vadd.f32 1.0, %v55_v8  ;;  %v27_v12 = vmul.f32 -0.5, %v55_v8  ;;  %v30_v15 = vand.u32 2147483647, %v55_v8 }
  0x14   :  { %v33_v11 = vadd.f32 1.0, %v57_v9  ;;  %v36_v13 = vmul.f32 -0.5, %v57_v9  ;;  %v39_v17 = vand.u32 2147483647, %v57_v9 }
  0x15   :  { %58 = vlog2.f32 %v24_v10  ;;  %v28_v14 = vadd.f32 1.0, %v27_v12  ;;  %vm31_vm0 = vcmp.lt.f32.partialorder %v30_v15, 0.0004427343 }
  0x16   :  { %60 = vlog2.f32 %v33_v11  ;;  %v37_v16 = vadd.f32 1.0, %v36_v13  ;;  %vm40_vm1 = vcmp.lt.f32.partialorder %v39_v17, 0.0004427343 }
  0x17   :  { %v29_v18 = vmul.f32 %v55_v8, %v28_v14 }
  0x18   :  { %v38_v21 = vmul.f32 %v57_v9, %v37_v16 }
  0x1f   :  { %v59_v19 = vpop.eup %58 }
  0x20   :  { %v61_v22 = vpop.eup %60  ;;  %v26_v23 = vmul.f32 0.6931472, %v59_v19 }
  0x21   :  { %v35_v25 = vmul.f32 0.6931472, %v61_v22 }
  0x22   :  { %v32_v26 = vsel %vm31_vm0, %v29_v18, %v26_v23 }
  0x23   :  { %v42_v28 = vadd.f32 %v32_v26, %v14_v20  ;;  %v41_v29 = vsel %vm40_vm1, %v38_v21, %v35_v25 }
  0x24   :  { %v43_v30 = vadd.f32 %v41_v29, %v15_v24 }
  0x25   :  { %v46_v31 = vmul.f32 %v45_v27, %v42_v28 }
  0x26   :  { %v47_v32 = vmul.f32 %v45_v27, %v43_v30 }
  0x27   :  { %48 = vst [vmem:[%s94_s2] sm:$0xff] %v46_v31 }
  0x28   :  { %49 = vst [vmem:[%s94_s2 + $0x8] sm:$0xff] %v47_v32 }

</bundles_post_ra>
